<compile_context>
chip_gen: v7x
topology: tpu7x:2x2x1
jax: 0.10.0
libtpu: 0.0.40
codegen_flags: <defaults>
</compile_context>

<pallas_src>
import jax
import jax.numpy as jnp
from jax.experimental import pallas as pl
from jax.experimental.pallas import tpu as pltpu


EMB_DIM = 100                       # selector1 default emb_dimension
DIMS = (EMB_DIM, 128, 256, 128, 64, 16, 2)
OUT = 2
LANE = 128                          # lane-aligned padded width
SUB = 16                            # bf16 sublane packing: batch-tile row multiple


def _round_up(n, m):
    return ((n + m - 1) // m) * m


# --------------------------------------------------------------------------
# Kernel
# --------------------------------------------------------------------------
def selector1_kernel(x_ref,
                     w1_ref, b1_ref, w2_ref, b2_ref, w3_ref, b3_ref,
                     w4_ref, b4_ref, w5_ref, b5_ref, w6_ref, b6_ref,
                     o_ref):
    """One batch tile of the selector1 MLP.

    Matmul operands are bf16 (native MXU rate on v5e/v6e/v7x); accumulation,
    bias-add and ReLU stay f32. Dropout = identity (eval mode). All padded
    lanes carry exact zeros, so padding does not change the math.
    """
    def layer(h_bf16, w_ref, b_ref):
        acc = jnp.dot(h_bf16, w_ref[...], preferred_element_type=jnp.float32)
        return acc + b_ref[...]

    h = jnp.maximum(layer(x_ref[...], w1_ref, b1_ref), 0.0)                  # fc1
    h = jnp.maximum(layer(h.astype(jnp.bfloat16), w2_ref, b2_ref), 0.0)      # fc2
    h = jnp.maximum(layer(h.astype(jnp.bfloat16), w3_ref, b3_ref), 0.0)      # fc3
    h = jnp.maximum(layer(h.astype(jnp.bfloat16), w4_ref, b4_ref), 0.0)      # fc4
    h = jnp.maximum(layer(h.astype(jnp.bfloat16), w5_ref, b5_ref), 0.0)      # fc5
    out = layer(h.astype(jnp.bfloat16), w6_ref, b6_ref)                      # fc6
    o_ref[...] = out.astype(o_ref.dtype)   # bf16, lane-dense 128-wide store


# --------------------------------------------------------------------------
# Parameters
# --------------------------------------------------------------------------
def init_params(key, emb_dim=EMB_DIM):
    """nn.Linear-style U(-1/sqrt(fan_in), 1/sqrt(fan_in)) init.

    Weights are stored transposed vs PyTorch, i.e. (in_features, out_features),
    so the kernel computes x @ W + b directly. Returns *unpadded* f32 params.
    """
    dims = (emb_dim,) + DIMS[1:]
    keys = jax.random.split(key, 2 * (len(dims) - 1))
    params = []
    for li in range(len(dims) - 1):
        fan_in, fan_out = dims[li], dims[li + 1]
        bound = 1.0 / jnp.sqrt(float(fan_in))
        w = jax.random.uniform(keys[2 * li], (fan_in, fan_out),
                               jnp.float32, -bound, bound)
        b = jax.random.uniform(keys[2 * li + 1], (1, fan_out),
                               jnp.float32, -bound, bound)
        params.append((w, b))
    return params  # [(w1,b1), ..., (w6,b6)]


def prepare_params(params):
    """Pad every layer's (fan_in, fan_out) to multiples of 128 lanes and cast
    weights to bf16 (biases stay f32). Zero padding is exact through ReLU.
    Call once at init — this stays out of the per-call jitted path.
    """
    flat = []
    for w, b in params:
        fin, fout = w.shape
        fin_p, fout_p = _round_up(fin, LANE), _round_up(fout, LANE)
        w_p = jnp.pad(w, ((0, fin_p - fin), (0, fout_p - fout))).astype(jnp.bfloat16)
        b_p = jnp.pad(b, ((0, 0), (0, fout_p - fout))).astype(jnp.float32)
        flat.extend((w_p, b_p))
    return tuple(flat)  # (w1,b1, ..., w6,b6) padded


# --------------------------------------------------------------------------
# Forward wrapper
# --------------------------------------------------------------------------
def selector1_forward(x, flat_params, *, tb=1024):
    """x: (B, emb_dim) f32. flat_params: padded tuple from prepare_params.

    Returns (B, 2) f32 logits. `tb` is the batch tile (sweep 512-1024 on v5e,
    1024-2048 on v6e/v7x).
    """
    B, D = x.shape
    D_pad = _round_up(D, LANE)
    assert flat_params[0].shape[0] == D_pad, "params not prepared for this emb_dim"

    # Lane-pad the embedding dim and stream x as bf16 (halves x HBM traffic).
    x_p = jnp.pad(x, ((0, 0), (0, D_pad - D))).astype(jnp.bfloat16)

    # Batch tile: multiple of 16 rows (bf16 sublane packing).
    b_rounded = _round_up(B, SUB)
    tb_eff = min(tb, b_rounded)
    # v7x megacore: if a big batch would be a single grid step, halve the tile
    # so the "parallel" batch axis can shard across both TensorCores.
    if b_rounded > 256 and b_rounded <= tb_eff:
        tb_eff = _round_up(pl.cdiv(b_rounded, 2), SUB)
    B_pad = _round_up(b_rounded, tb_eff)
    if B_pad != B:
        x_p = jnp.pad(x_p, ((0, B_pad - B), (0, 0)))
    grid = (B_pad // tb_eff,)

    # BlockSpecs: x / out stream per batch tile; weights & biases use constant
    # index_maps so they stay resident in VMEM across grid iterations.
    x_spec = pl.BlockSpec((tb_eff, D_pad), lambda i: (i, 0))
    param_specs = [pl.BlockSpec(a.shape, lambda i: (0, 0)) for a in flat_params]
    out_spec = pl.BlockSpec((tb_eff, LANE), lambda i: (i, 0))

    # Cost / VMEM hints from the actual (padded) footprint.
    lane_dims = [D_pad] + [_round_up(d, LANE) for d in DIMS[1:]]
    flops = 2 * B_pad * sum(lane_dims[i] * lane_dims[i + 1] for i in range(6))
    param_bytes = sum(int(a.size) * a.dtype.itemsize for a in flat_params)
    bytes_accessed = 2 * B_pad * D_pad + 2 * B_pad * LANE + param_bytes
    vmem_bytes = (param_bytes
                  + 2 * tb_eff * D_pad * 2      # double-buffered bf16 x tiles
                  + 2 * tb_eff * LANE * 2       # double-buffered bf16 out tiles
                  + 8 * tb_eff * 256 * 4)       # f32/bf16 intermediate headroom
    vmem_limit = int(min(max(vmem_bytes, 4 << 20), 64 << 20))

    out = pl.pallas_call(
        selector1_kernel,
        out_shape=jax.ShapeDtypeStruct((B_pad, LANE), jnp.bfloat16),
        grid_spec=pltpu.PrefetchScalarGridSpec(
            num_scalar_prefetch=0,
            grid=grid,
            in_specs=[x_spec] + param_specs,
            out_specs=out_spec,
        ),
        compiler_params=pltpu.CompilerParams(
            dimension_semantics=("parallel",),
            vmem_limit_bytes=vmem_limit,
        ),
        cost_estimate=pl.CostEstimate(
            flops=flops, transcendentals=0, bytes_accessed=bytes_accessed),
    )(x_p, *flat_params)

    return out[:B, :OUT].astype(jnp.float32)


selector1_forward_jit = jax.jit(selector1_forward, static_argnames=("tb",))


# --------------------------------------------------------------------------
# Pure-JAX references
# --------------------------------------------------------------------------
def selector1_reference_f32(x, params):
    """Full-f32 reference (eval-mode dropout = identity)."""
    h = x
    for li, (w, b) in enumerate(params):
        h = h @ w + b
        if li < len(params) - 1:
            h = jnp.maximum(h, 0.0)
    return h


def selector1_reference_bf16(x, params):
    """Mimics the kernel numerics: bf16 dot operands, f32 accumulate/bias/ReLU,
    bf16 final store (zero padding contributes exactly nothing, so unpadded
    params give the same result)."""
    h = x.astype(jnp.bfloat16)
    for li, (w, b) in enumerate(params):
        acc = jnp.dot(h, w.astype(jnp.bfloat16),
                      preferred_element_type=jnp.float32) + b
        if li < len(params) - 1:
            acc = jnp.maximum(acc, 0.0)
        h = acc.astype(jnp.bfloat16)
    return h.astype(jnp.float32)


# --------------------------------------------------------------------------
# Demo / self-test
# --------------------------------------------------------------------------
if __name__ == "__main__":
    key = jax.random.PRNGKey(0)
    kx, kp = jax.random.split(key)

    params = init_params(kp)
    flat = prepare_params(params)        # pad + bf16-cast once, outside jit

    # Small demo batch.
    B = 8
    x = jax.random.normal(kx, (B, EMB_DIM), jnp.float32)
    out = jax.block_until_ready(selector1_forward_jit(x, flat))
    assert out.shape == (B, OUT), out.shape

    ref_bf16 = selector1_reference_bf16(x, params)
    ref_f32 = selector1_reference_f32(x, params)
    assert jnp.allclose(out, ref_bf16, atol=5e-3, rtol=1e-2), (
        float(jnp.max(jnp.abs(out - ref_bf16))))
    assert jnp.allclose(out, ref_f32, atol=1e-1, rtol=1e-1), (
        float(jnp.max(jnp.abs(out - ref_f32))))

    # Exercise multi-step batch tiling (grid > 1) with a small tile.
    B2 = 200
    x2 = jax.random.normal(jax.random.PRNGKey(1), (B2, EMB_DIM), jnp.float32)
    out2 = jax.block_until_ready(selector1_forward_jit(x2, flat, tb=64))
    assert out2.shape == (B2, OUT), out2.shape
    ref2 = selector1_reference_bf16(x2, params)
    assert jnp.allclose(out2, ref2, atol=5e-3, rtol=1e-2), (
        float(jnp.max(jnp.abs(out2 - ref2))))

    print("KERNEL_OK")
</pallas_src>

<mosaic_0001>
module attributes {stable_mosaic.version = 11 : i64} {
  func.func @selector1_kernel(%arg0: i32, %arg1: memref<16x128xbf16, #tpu.memory_space<vmem>>, %arg2: memref<128x128xbf16, #tpu.memory_space<vmem>>, %arg3: memref<1x128xf32, #tpu.memory_space<vmem>>, %arg4: memref<128x256xbf16, #tpu.memory_space<vmem>>, %arg5: memref<1x256xf32, #tpu.memory_space<vmem>>, %arg6: memref<256x128xbf16, #tpu.memory_space<vmem>>, %arg7: memref<1x128xf32, #tpu.memory_space<vmem>>, %arg8: memref<128x128xbf16, #tpu.memory_space<vmem>>, %arg9: memref<1x128xf32, #tpu.memory_space<vmem>>, %arg10: memref<128x128xbf16, #tpu.memory_space<vmem>>, %arg11: memref<1x128xf32, #tpu.memory_space<vmem>>, %arg12: memref<128x128xbf16, #tpu.memory_space<vmem>>, %arg13: memref<1x128xf32, #tpu.memory_space<vmem>>, %arg14: memref<16x128xbf16, #tpu.memory_space<vmem>>) attributes {dimension_semantics = [#tpu.dimension_semantics<parallel>], iteration_bounds = array<i64: 1>, scalar_prefetch = 0 : i64, scratch_operands = 0 : i64, tpu.core_type = #tpu.core_type<tc>, window_params = [{transform_indices = @transform_0, window_bounds = array<i64: 16, 128>}, {pipeline_mode = #tpu.pipeline_mode<synchronous>, transform_indices = @transform_1, window_bounds = array<i64: 128, 128>}, {pipeline_mode = #tpu.pipeline_mode<synchronous>, transform_indices = @transform_2, window_bounds = array<i64: 1, 128>}, {pipeline_mode = #tpu.pipeline_mode<synchronous>, transform_indices = @transform_3, window_bounds = array<i64: 128, 256>}, {pipeline_mode = #tpu.pipeline_mode<synchronous>, transform_indices = @transform_4, window_bounds = array<i64: 1, 256>}, {pipeline_mode = #tpu.pipeline_mode<synchronous>, transform_indices = @transform_5, window_bounds = array<i64: 256, 128>}, {pipeline_mode = #tpu.pipeline_mode<synchronous>, transform_indices = @transform_6, window_bounds = array<i64: 1, 128>}, {pipeline_mode = #tpu.pipeline_mode<synchronous>, transform_indices = @transform_7, window_bounds = array<i64: 128, 128>}, {pipeline_mode = #tpu.pipeline_mode<synchronous>, transform_indices = @transform_8, window_bounds = array<i64: 1, 128>}, {pipeline_mode = #tpu.pipeline_mode<synchronous>, transform_indices = @transform_9, window_bounds = array<i64: 128, 128>}, {pipeline_mode = #tpu.pipeline_mode<synchronous>, transform_indices = @transform_10, window_bounds = array<i64: 1, 128>}, {pipeline_mode = #tpu.pipeline_mode<synchronous>, transform_indices = @transform_11, window_bounds = array<i64: 128, 128>}, {pipeline_mode = #tpu.pipeline_mode<synchronous>, transform_indices = @transform_12, window_bounds = array<i64: 1, 128>}, {transform_indices = @transform_13, window_bounds = array<i64: 16, 128>}]} {
    %c0 = arith.constant 0 : index
    %c0_0 = arith.constant 0 : index
    %0 = vector.load %arg1[%c0, %c0_0] : memref<16x128xbf16, #tpu.memory_space<vmem>>, vector<16x128xbf16>
    %c0_1 = arith.constant 0 : index
    %c0_2 = arith.constant 0 : index
    %1 = vector.load %arg2[%c0_1, %c0_2] : memref<128x128xbf16, #tpu.memory_space<vmem>>, vector<128x128xbf16>
    %cst = arith.constant dense<0.000000e+00> : vector<16x128xf32>
    %2 = tpu.matmul %0, %1, %cst {dimension_numbers = #tpu.dot_dimension_numbers<[1], [0], [0], [1], [0, 0, 1, 1], [], []>} : vector<16x128xbf16>, vector<128x128xbf16>, vector<16x128xf32> -> vector<16x128xf32>
    %c0_3 = arith.constant 0 : index
    %c0_4 = arith.constant 0 : index
    %3 = vector.load %arg3[%c0_3, %c0_4] : memref<1x128xf32, #tpu.memory_space<vmem>>, vector<1x128xf32>
    %4 = vector.broadcast %3 : vector<1x128xf32> to vector<16x128xf32>
    %5 = arith.addf %2, %4 : vector<16x128xf32>
    %cst_5 = arith.constant 0.000000e+00 : f32
    %6 = vector.broadcast %cst_5 : f32 to vector<16x128xf32>
    %7 = arith.maximumf %5, %6 : vector<16x128xf32>
    %8 = arith.truncf %7 : vector<16x128xf32> to vector<16x128xbf16>
    %c0_6 = arith.constant 0 : index
    %c0_7 = arith.constant 0 : index
    %9 = vector.load %arg4[%c0_6, %c0_7] : memref<128x256xbf16, #tpu.memory_space<vmem>>, vector<128x256xbf16>
    %cst_8 = arith.constant dense<0.000000e+00> : vector<16x256xf32>
    %10 = tpu.matmul %8, %9, %cst_8 {dimension_numbers = #tpu.dot_dimension_numbers<[1], [0], [0], [1], [0, 0, 1, 1], [], []>} : vector<16x128xbf16>, vector<128x256xbf16>, vector<16x256xf32> -> vector<16x256xf32>
    %c0_9 = arith.constant 0 : index
    %c0_10 = arith.constant 0 : index
    %11 = vector.load %arg5[%c0_9, %c0_10] : memref<1x256xf32, #tpu.memory_space<vmem>>, vector<1x256xf32>
    %12 = vector.broadcast %11 : vector<1x256xf32> to vector<16x256xf32>
    %13 = arith.addf %10, %12 : vector<16x256xf32>
    %cst_11 = arith.constant 0.000000e+00 : f32
    %14 = vector.broadcast %cst_11 : f32 to vector<16x256xf32>
    %15 = arith.maximumf %13, %14 : vector<16x256xf32>
    %16 = arith.truncf %15 : vector<16x256xf32> to vector<16x256xbf16>
    %c0_12 = arith.constant 0 : index
    %c0_13 = arith.constant 0 : index
    %17 = vector.load %arg6[%c0_12, %c0_13] : memref<256x128xbf16, #tpu.memory_space<vmem>>, vector<256x128xbf16>
    %cst_14 = arith.constant dense<0.000000e+00> : vector<16x128xf32>
    %18 = tpu.matmul %16, %17, %cst_14 {dimension_numbers = #tpu.dot_dimension_numbers<[1], [0], [0], [1], [0, 0, 1, 1], [], []>} : vector<16x256xbf16>, vector<256x128xbf16>, vector<16x128xf32> -> vector<16x128xf32>
    %c0_15 = arith.constant 0 : index
    %c0_16 = arith.constant 0 : index
    %19 = vector.load %arg7[%c0_15, %c0_16] : memref<1x128xf32, #tpu.memory_space<vmem>>, vector<1x128xf32>
    %20 = vector.broadcast %19 : vector<1x128xf32> to vector<16x128xf32>
    %21 = arith.addf %18, %20 : vector<16x128xf32>
    %cst_17 = arith.constant 0.000000e+00 : f32
    %22 = vector.broadcast %cst_17 : f32 to vector<16x128xf32>
    %23 = arith.maximumf %21, %22 : vector<16x128xf32>
    %24 = arith.truncf %23 : vector<16x128xf32> to vector<16x128xbf16>
    %c0_18 = arith.constant 0 : index
    %c0_19 = arith.constant 0 : index
    %25 = vector.load %arg8[%c0_18, %c0_19] : memref<128x128xbf16, #tpu.memory_space<vmem>>, vector<128x128xbf16>
    %cst_20 = arith.constant dense<0.000000e+00> : vector<16x128xf32>
    %26 = tpu.matmul %24, %25, %cst_20 {dimension_numbers = #tpu.dot_dimension_numbers<[1], [0], [0], [1], [0, 0, 1, 1], [], []>} : vector<16x128xbf16>, vector<128x128xbf16>, vector<16x128xf32> -> vector<16x128xf32>
    %c0_21 = arith.constant 0 : index
    %c0_22 = arith.constant 0 : index
    %27 = vector.load %arg9[%c0_21, %c0_22] : memref<1x128xf32, #tpu.memory_space<vmem>>, vector<1x128xf32>
    %28 = vector.broadcast %27 : vector<1x128xf32> to vector<16x128xf32>
    %29 = arith.addf %26, %28 : vector<16x128xf32>
    %cst_23 = arith.constant 0.000000e+00 : f32
    %30 = vector.broadcast %cst_23 : f32 to vector<16x128xf32>
    %31 = arith.maximumf %29, %30 : vector<16x128xf32>
    %32 = arith.truncf %31 : vector<16x128xf32> to vector<16x128xbf16>
    %c0_24 = arith.constant 0 : index
    %c0_25 = arith.constant 0 : index
    %33 = vector.load %arg10[%c0_24, %c0_25] : memref<128x128xbf16, #tpu.memory_space<vmem>>, vector<128x128xbf16>
    %cst_26 = arith.constant dense<0.000000e+00> : vector<16x128xf32>
    %34 = tpu.matmul %32, %33, %cst_26 {dimension_numbers = #tpu.dot_dimension_numbers<[1], [0], [0], [1], [0, 0, 1, 1], [], []>} : vector<16x128xbf16>, vector<128x128xbf16>, vector<16x128xf32> -> vector<16x128xf32>
    %c0_27 = arith.constant 0 : index
    %c0_28 = arith.constant 0 : index
    %35 = vector.load %arg11[%c0_27, %c0_28] : memref<1x128xf32, #tpu.memory_space<vmem>>, vector<1x128xf32>
    %36 = vector.broadcast %35 : vector<1x128xf32> to vector<16x128xf32>
    %37 = arith.addf %34, %36 : vector<16x128xf32>
    %cst_29 = arith.constant 0.000000e+00 : f32
    %38 = vector.broadcast %cst_29 : f32 to vector<16x128xf32>
    %39 = arith.maximumf %37, %38 : vector<16x128xf32>
    %40 = arith.truncf %39 : vector<16x128xf32> to vector<16x128xbf16>
    %c0_30 = arith.constant 0 : index
    %c0_31 = arith.constant 0 : index
    %41 = vector.load %arg12[%c0_30, %c0_31] : memref<128x128xbf16, #tpu.memory_space<vmem>>, vector<128x128xbf16>
    %cst_32 = arith.constant dense<0.000000e+00> : vector<16x128xf32>
    %42 = tpu.matmul %40, %41, %cst_32 {dimension_numbers = #tpu.dot_dimension_numbers<[1], [0], [0], [1], [0, 0, 1, 1], [], []>} : vector<16x128xbf16>, vector<128x128xbf16>, vector<16x128xf32> -> vector<16x128xf32>
    %c0_33 = arith.constant 0 : index
    %c0_34 = arith.constant 0 : index
    %43 = vector.load %arg13[%c0_33, %c0_34] : memref<1x128xf32, #tpu.memory_space<vmem>>, vector<1x128xf32>
    %44 = vector.broadcast %43 : vector<1x128xf32> to vector<16x128xf32>
    %45 = arith.addf %42, %44 : vector<16x128xf32>
    %46 = arith.truncf %45 : vector<16x128xf32> to vector<16x128xbf16>
    %c0_35 = arith.constant 0 : index
    %c0_36 = arith.constant 0 : index
    %47 = vector.load %arg14[%c0_35, %c0_36] : memref<16x128xbf16, #tpu.memory_space<vmem>>, vector<16x128xbf16>
    tpu.vector_store %arg14[%c0_35, %c0_36], %46 {strides = array<i32>} : memref<16x128xbf16, #tpu.memory_space<vmem>>, vector<16x128xbf16>,
    return
  }
  func.func @transform_0(%arg0: i32) -> (i32, i32) {
    %c0_i32 = arith.constant 0 : i32
    %c0_i32_0 = arith.constant 0 : i32
    return %arg0, %c0_i32 : i32, i32
  }
  func.func @transform_1(%arg0: i32) -> (i32, i32) {
    %c0_i32 = arith.constant 0 : i32
    %c0_i32_0 = arith.constant 0 : i32
    %c0_i32_1 = arith.constant 0 : i32
    return %c0_i32, %c0_i32_0 : i32, i32
  }
  func.func @transform_2(%arg0: i32) -> (i32, i32) {
    %c0_i32 = arith.constant 0 : i32
    %c0_i32_0 = arith.constant 0 : i32
    %c0_i32_1 = arith.constant 0 : i32
    return %c0_i32, %c0_i32_0 : i32, i32
  }
  func.func @transform_3(%arg0: i32) -> (i32, i32) {
    %c0_i32 = arith.constant 0 : i32
    %c0_i32_0 = arith.constant 0 : i32
    %c0_i32_1 = arith.constant 0 : i32
    return %c0_i32, %c0_i32_0 : i32, i32
  }
  func.func @transform_4(%arg0: i32) -> (i32, i32) {
    %c0_i32 = arith.constant 0 : i32
    %c0_i32_0 = arith.constant 0 : i32
    %c0_i32_1 = arith.constant 0 : i32
    return %c0_i32, %c0_i32_0 : i32, i32
  }
  func.func @transform_5(%arg0: i32) -> (i32, i32) {
    %c0_i32 = arith.constant 0 : i32
    %c0_i32_0 = arith.constant 0 : i32
    %c0_i32_1 = arith.constant 0 : i32
    return %c0_i32, %c0_i32_0 : i32, i32
  }
  func.func @transform_6(%arg0: i32) -> (i32, i32) {
    %c0_i32 = arith.constant 0 : i32
    %c0_i32_0 = arith.constant 0 : i32
    %c0_i32_1 = arith.constant 0 : i32
    return %c0_i32, %c0_i32_0 : i32, i32
  }
  func.func @transform_7(%arg0: i32) -> (i32, i32) {
    %c0_i32 = arith.constant 0 : i32
    %c0_i32_0 = arith.constant 0 : i32
    %c0_i32_1 = arith.constant 0 : i32
    return %c0_i32, %c0_i32_0 : i32, i32
  }
  func.func @transform_8(%arg0: i32) -> (i32, i32) {
    %c0_i32 = arith.constant 0 : i32
    %c0_i32_0 = arith.constant 0 : i32
    %c0_i32_1 = arith.constant 0 : i32
    return %c0_i32, %c0_i32_0 : i32, i32
  }
  func.func @transform_9(%arg0: i32) -> (i32, i32) {
    %c0_i32 = arith.constant 0 : i32
    %c0_i32_0 = arith.constant 0 : i32
    %c0_i32_1 = arith.constant 0 : i32
    return %c0_i32, %c0_i32_0 : i32, i32
  }
  func.func @transform_10(%arg0: i32) -> (i32, i32) {
    %c0_i32 = arith.constant 0 : i32
    %c0_i32_0 = arith.constant 0 : i32
    %c0_i32_1 = arith.constant 0 : i32
    return %c0_i32, %c0_i32_0 : i32, i32
  }
  func.func @transform_11(%arg0: i32) -> (i32, i32) {
    %c0_i32 = arith.constant 0 : i32
    %c0_i32_0 = arith.constant 0 : i32
    %c0_i32_1 = arith.constant 0 : i32
    return %c0_i32, %c0_i32_0 : i32, i32
  }
  func.func @transform_12(%arg0: i32) -> (i32, i32) {
    %c0_i32 = arith.constant 0 : i32
    %c0_i32_0 = arith.constant 0 : i32
    %c0_i32_1 = arith.constant 0 : i32
    return %c0_i32, %c0_i32_0 : i32, i32
  }
  func.func @transform_13(%arg0: i32) -> (i32, i32) {
    %c0_i32 = arith.constant 0 : i32
    %c0_i32_0 = arith.constant 0 : i32
    return %arg0, %c0_i32 : i32, i32
  }
}

</mosaic_0001>

<bundles_post_ra>
// kernel: selector1_forward.1
= control target key start
LH: loop header
LB: loop body
LE: loop exit
PB: predicated region body
PF: predicated region fallthrough
CT: control target
= control target key end

     0   :  { %18 = vsyncpa [#allocation3], 0  ;;  %s1775_s0 = inlined_call_operand.vmem [shape: bf16[16,128], index: 0, kind: input, shape index: {}]   ;;  %s1776_s1 = inlined_call_operand.hbm [shape: bf16[128,128], index: 1, kind: input, shape index: {}]   ;;  %s1777_s2 = inlined_call_operand.hbm [shape: f32[1,128], index: 2, kind: input, shape index: {}]   ;;  %s1778_s3 = inlined_call_operand.hbm [shape: bf16[128,256], index: 3, kind: input, shape index: {}]   ;;  %s1779_s4 = inlined_call_operand.vmem [shape: f32[1,256], index: 4, kind: input, shape index: {}]   ;;  %s1780_s5 = inlined_call_operand.hbm [shape: bf16[256,128], index: 5, kind: input, shape index: {}]   ;;  %s1781_s6 = inlined_call_operand.hbm [shape: f32[1,128], index: 6, kind: input, shape index: {}]   ;;  %s1782_s7 = inlined_call_operand.hbm [shape: bf16[128,128], index: 7, kind: input, shape index: {}]   ;;  %s1783_s8 = inlined_call_operand.hbm [shape: f32[1,128], index: 8, kind: input, shape index: {}]   ;;  %s1784_s9 = inlined_call_operand.hbm [shape: bf16[128,128], index: 9, kind: input, shape index: {}]   ;;  %s1785_s10 = inlined_call_operand.hbm [shape: f32[1,128], index: 10, kind: input, shape index: {}]   ;;  %s1786_s11 = inlined_call_operand.vmem [shape: bf16[128,128], index: 11, kind: input, shape index: {}]   ;;  %s1787_s12 = inlined_call_operand.vmem [shape: f32[1,128], index: 12, kind: input, shape index: {}]   ;;  %s1788_s13 = inlined_call_operand.vmem [shape: bf16[16,128], index: 13, kind: output, shape index: {}]  }
   0x1   :  { %19 = vsyncpa [#allocation5], 0 }
   0x2   :  { %20 = vsyncpa [#allocation8], 0 }
   0x3   :  { %21 = vsyncpa [#allocation11], 0 }
   0x4   :  { %22 = vsyncpa [#allocation14], 0  ;;  %s1493_s25 = smov [#allocation4]   ;;  %s1285_s29 = scalar_lea.hbm %s1777_s2, 16 }
   0x5   :  { %s43_s26 = sshll.u32 %s1493_s25, 4  ;;  %p1286_p0 = scmp.ne.s32.totalorder %s1777_s2, %s1285_s29  ;;  %s44_s26 = int_to_ptr.vmem [resolvable:$true] %s43_s26 }
   0x6   :  { %p1289_p1 = scmp.lt.u32.totalorder %s1285_s29, %s1777_s2 }
   0x8   :  { %p1291_p2 = pnand %p1289_p1, %p1286_p0 }
   0xa   :  { %1294 = shalt.err (!%p1291_p2)
}
   0xb   :  { %s1295_s17 = scalar_lea.vmem %s44_s26, 16  ;;  %s1299_s18 = scalar_lea.vmem %s44_s26, 32 }
   0xc   :  { %p1296_p3 = scmp.ne.s32.totalorder %s44_s26, %s1295_s17  ;;  %p1300_p4 = scmp.lt.s32.totalorder %s44_s26, %s44_s26 }
   0xd   :  { %p1301_p5 = scmp.lt.s32.totalorder %s1299_s18, %s1295_s17 }
   0xf   :  { %p1302_p6 = por %p1301_p5, %p1300_p4 }
  0x11   :  { %p1303_p7 = pnand %p1302_p6, %p1296_p3 }
  0x13   :  { %1306 = shalt.err (!%p1303_p7)
}
  0x14   :  { %46 = dma.hbm_to_vmem [thread:$0]  %s1777_s2, 16, %s44_s26, [#allocation5]  }
  0x15   :  { %s1494_s21 = smov [#allocation7]   ;;  %s1495_s23 = smov [#allocation10]  }
  0x16   :  { %s66_s22 = sshll.u32 %s1494_s21, 4  ;;  %s88_s24 = sshll.u32 %s1495_s23, 4  ;;  %s67_s22 = int_to_ptr.vmem [resolvable:$true] %s66_s22  ;;  %s89_s24 = int_to_ptr.vmem [resolvable:$true] %s88_s24 }
  0x17   :  { %s1307_s28 = scalar_lea.hbm %s1780_s5, 2048 }
  0x18   :  { %p1308_p8 = scmp.ne.s32.totalorder %s1780_s5, %s1307_s28  ;;  %p1311_p9 = scmp.lt.u32.totalorder %s1307_s28, %s1780_s5 }
  0x1a   :  { %p1313_p10 = pnand %p1311_p9, %p1308_p8 }
  0x1c   :  { %1316 = shalt.err (!%p1313_p10)
}
  0x1d   :  { %s1317_s2 = scalar_lea.vmem %s67_s22, 2048  ;;  %p1322_p12 = scmp.lt.s32.totalorder %s67_s22, %s67_s22 }
  0x1e   :  { %p1318_p11 = scmp.ne.s32.totalorder %s67_s22, %s1317_s2  ;;  %p1323_p13 = scmp.lt.s32.totalorder %s1317_s2, %s1317_s2 }
  0x20   :  { %p1324_p0 = por %p1323_p13, %p1322_p12 }
  0x22   :  { %p1325_p1 = pnand %p1324_p0, %p1318_p11 }
  0x24   :  { %1328 = shalt.err (!%p1325_p1)
}
  0x25   :  { %s1496_s26 = smov 64   ;;  %s1497_s16 = smov 4  }
  0x26   :  { %72 = dma.hbm_to_vmem [thread:$0]  %s1780_s5, 2048, %s67_s22, [#allocation8], %s1496_s26, %s1496_s26, %s1497_s16  }
  0x27   :  { %s1329_s21 = scalar_lea.hbm %s1782_s7, 1024 }
  0x28   :  { %p1330_p2 = scmp.ne.s32.totalorder %s1782_s7, %s1329_s21  ;;  %p1333_p3 = scmp.lt.u32.totalorder %s1329_s21, %s1782_s7 }
  0x2a   :  { %p1335_p4 = pnand %p1333_p3, %p1330_p2 }
  0x2c   :  { %1338 = shalt.err (!%p1335_p4)
}
  0x2d   :  { %s1339_s29 = scalar_lea.vmem %s89_s24, 1024  ;;  %p1344_p6 = scmp.lt.s32.totalorder %s89_s24, %s89_s24 }
  0x2e   :  { %p1340_p5 = scmp.ne.s32.totalorder %s89_s24, %s1339_s29  ;;  %p1345_p7 = scmp.lt.s32.totalorder %s1339_s29, %s1339_s29 }
  0x30   :  { %p1346_p8 = por %p1345_p7, %p1344_p6 }
  0x32   :  { %p1347_p9 = pnand %p1346_p8, %p1340_p5 }
  0x34   :  { %1350 = shalt.err (!%p1347_p9)
}
  0x35   :  { %94 = dma.hbm_to_vmem [thread:$0]  %s1782_s7, 1024, %s89_s24, [#allocation11], %s1496_s26, %s1496_s26, %s1497_s16  }
  0x36   :  { %s1498_s30 = smov [#allocation13]   ;;  %s1499_s15 = smov [#allocation2]  }
  0x37   :  { %s110_s14 = sshll.u32 %s1498_s30, 4  ;;  %s30_s2 = sshll.u32 %s1499_s15, 4  ;;  %s111_s14 = int_to_ptr.vmem [resolvable:$true] %s110_s14  ;;  %s31_s2 = int_to_ptr.vmem [resolvable:$true] %s30_s2 }
  0x38   :  { %s1351_s19 = scalar_lea.hbm %s1784_s9, 1024 }
  0x39   :  { %p1352_p10 = scmp.ne.s32.totalorder %s1784_s9, %s1351_s19  ;;  %p1355_p11 = scmp.lt.u32.totalorder %s1351_s19, %s1784_s9 }
  0x3b   :  { %p1357_p12 = pnand %p1355_p11, %p1352_p10 }
  0x3d   :  { %1360 = shalt.err (!%p1357_p12)
}
  0x3e   :  { %s1361_s7 = scalar_lea.vmem %s111_s14, 1024  ;;  %p1366_p0 = scmp.lt.s32.totalorder %s111_s14, %s111_s14 }
  0x3f   :  { %p1362_p13 = scmp.ne.s32.totalorder %s111_s14, %s1361_s7  ;;  %p1367_p1 = scmp.lt.s32.totalorder %s1361_s7, %s1361_s7 }
  0x41   :  { %p1368_p2 = por %p1367_p1, %p1366_p0 }
  0x43   :  { %p1369_p3 = pnand %p1368_p2, %p1362_p13 }
  0x45   :  { %1372 = shalt.err (!%p1369_p3)
}
  0x46   :  { %116 = dma.hbm_to_vmem [thread:$0]  %s1784_s9, 1024, %s111_s14, [#allocation14], %s1496_s26, %s1496_s26, %s1497_s16  }
  0x47   :  { %s1373_s5 = scalar_lea.hbm %s1776_s1, 1024 }
  0x48   :  { %p1374_p4 = scmp.ne.s32.totalorder %s1776_s1, %s1373_s5  ;;  %p1377_p5 = scmp.lt.u32.totalorder %s1373_s5, %s1776_s1 }
  0x4a   :  { %p1379_p6 = pnand %p1377_p5, %p1374_p4 }
  0x4c   :  { %1382 = shalt.err (!%p1379_p6)
}
  0x4d   :  { %s1383_s18 = scalar_lea.vmem %s31_s2, 1024  ;;  %p1388_p8 = scmp.lt.s32.totalorder %s31_s2, %s31_s2 }
  0x4e   :  { %p1384_p7 = scmp.ne.s32.totalorder %s31_s2, %s1383_s18  ;;  %p1389_p9 = scmp.lt.s32.totalorder %s1383_s18, %s1383_s18 }
  0x50   :  { %p1390_p10 = por %p1389_p9, %p1388_p8 }
  0x52   :  { %p1391_p11 = pnand %p1390_p10, %p1384_p7 }
  0x54   :  { %1394 = shalt.err (!%p1391_p11)
}
  0x55   :  { %36 = dma.hbm_to_vmem [thread:$0]  %s1776_s1, 1024, %s31_s2, [#allocation3], %s1496_s26, %s1496_s26, %s1497_s16  }
  0x56   :  { %s1500_s19 = smov [#allocation6]   ;;  %s1395_s25 = scalar_lea.hbm %s1778_s3, 2048 }
  0x57   :  { %s52_s20 = sshll.u32 %s1500_s19, 4  ;;  %p1396_p12 = scmp.ne.s32.totalorder %s1778_s3, %s1395_s25  ;;  %s53_s20 = int_to_ptr.vmem [resolvable:$true] %s52_s20 }
  0x58   :  { %p1399_p13 = scmp.lt.u32.totalorder %s1395_s25, %s1778_s3 }
  0x5a   :  { %p1401_p0 = pnand %p1399_p13, %p1396_p12 }
  0x5c   :  { %1404 = shalt.err (!%p1401_p0)
}
  0x5d   :  { %s1405_s29 = scalar_lea.vmem %s53_s20, 2048  ;;  %p1410_p2 = scmp.lt.s32.totalorder %s53_s20, %s53_s20 }
  0x5e   :  { %p1406_p1 = scmp.ne.s32.totalorder %s53_s20, %s1405_s29  ;;  %p1411_p3 = scmp.lt.s32.totalorder %s1405_s29, %s1405_s29 }
  0x60   :  { %p1412_p4 = por %p1411_p3, %p1410_p2 }
  0x62   :  { %p1413_p5 = pnand %p1412_p4, %p1406_p1 }
  0x64   :  { %1416 = shalt.err (!%p1413_p5)
}
  0x65   :  { %s1501_s1 = smov 128   ;;  %s1502_s26 = smov 8  }
  0x66   :  { %58 = dma.hbm_to_vmem [thread:$0]  %s1778_s3, 2048, %s53_s20, [#allocation5], %s1501_s1, %s1501_s1, %s1502_s26  }
  0x67   :  { %s1503_s5 = smov [#allocation9]   ;;  %s1504_s30 = smov [#allocation12]  }
  0x68   :  { %s79_s22 = sshll.u32 %s1503_s5, 4  ;;  %s101_s15 = sshll.u32 %s1504_s30, 4  ;;  %s80_s22 = int_to_ptr.vmem [resolvable:$true] %s79_s22  ;;  %s102_s15 = int_to_ptr.vmem [resolvable:$true] %s101_s15 }
  0x69   :  { %s1417_s9 = scalar_lea.hbm %s1781_s6, 16 }
  0x6a   :  { %p1418_p6 = scmp.ne.s32.totalorder %s1781_s6, %s1417_s9  ;;  %p1421_p7 = scmp.lt.u32.totalorder %s1417_s9, %s1781_s6 }
  0x6c   :  { %p1423_p8 = pnand %p1421_p7, %p1418_p6 }
  0x6e   :  { %1426 = shalt.err (!%p1423_p8)
}
  0x6f   :  { %s1427_s3 = scalar_lea.vmem %s80_s22, 16  ;;  %s1431_s20 = scalar_lea.vmem %s80_s22, 32 }
  0x70   :  { %p1428_p9 = scmp.ne.s32.totalorder %s80_s22, %s1427_s3  ;;  %p1432_p10 = scmp.lt.s32.totalorder %s80_s22, %s80_s22 }
  0x71   :  { %p1433_p11 = scmp.lt.s32.totalorder %s1431_s20, %s1427_s3 }
  0x73   :  { %p1434_p12 = por %p1433_p11, %p1432_p10 }
  0x75   :  { %p1435_p13 = pnand %p1434_p12, %p1428_p9 }
  0x77   :  { %1438 = shalt.err (!%p1435_p13)
}
  0x78   :  { %82 = dma.hbm_to_vmem [thread:$0]  %s1781_s6, 16, %s80_s22, [#allocation8]  }
  0x79   :  { %s1439_s28 = scalar_lea.hbm %s1783_s8, 16 }
  0x7a   :  { %p1440_p0 = scmp.ne.s32.totalorder %s1783_s8, %s1439_s28  ;;  %p1443_p1 = scmp.lt.u32.totalorder %s1439_s28, %s1783_s8 }
  0x7c   :  { %p1445_p2 = pnand %p1443_p1, %p1440_p0 }
  0x7e   :  { %1448 = shalt.err (!%p1445_p2)
}
  0x7f   :  { %s1449_s2 = scalar_lea.vmem %s102_s15, 16  ;;  %s1453_s5 = scalar_lea.vmem %s102_s15, 32 }
  0x80   :  { %p1450_p3 = scmp.ne.s32.totalorder %s102_s15, %s1449_s2  ;;  %p1454_p4 = scmp.lt.s32.totalorder %s102_s15, %s102_s15 }
  0x81   :  { %p1455_p5 = scmp.lt.s32.totalorder %s1453_s5, %s1449_s2 }
  0x83   :  { %p1456_p6 = por %p1455_p5, %p1454_p4 }
  0x85   :  { %p1457_p7 = pnand %p1456_p6, %p1450_p3 }
  0x87   :  { %1460 = shalt.err (!%p1457_p7)
}
  0x88   :  { %104 = dma.hbm_to_vmem [thread:$0]  %s1783_s8, 16, %s102_s15, [#allocation11]  }
  0x89   :  { %s1505_s30 = smov [#allocation15]   ;;  %s1461_s14 = scalar_lea.hbm %s1785_s10, 16 }
  0x8a   :  { %s123_s17 = sshll.u32 %s1505_s30, 4  ;;  %p1462_p8 = scmp.ne.s32.totalorder %s1785_s10, %s1461_s14  ;;  %s124_s17 = int_to_ptr.vmem [resolvable:$true] %s123_s17 }
  0x8b   :  { %p1465_p9 = scmp.lt.u32.totalorder %s1461_s14, %s1785_s10 }
  0x8d   :  { %p1467_p10 = pnand %p1465_p9, %p1462_p8 }
  0x8f   :  { %1470 = shalt.err (!%p1467_p10)
}
  0x90   :  { %s1471_s20 = scalar_lea.vmem %s124_s17, 16  ;;  %s1475_s8 = scalar_lea.vmem %s124_s17, 32 }
  0x91   :  { %p1472_p11 = scmp.ne.s32.totalorder %s124_s17, %s1471_s20  ;;  %p1476_p12 = scmp.lt.s32.totalorder %s124_s17, %s124_s17 }
  0x92   :  { %p1477_p13 = scmp.lt.s32.totalorder %s1475_s8, %s1471_s20 }
  0x94   :  { %p1478_p0 = por %p1477_p13, %p1476_p12 }
  0x96   :  { %p1479_p1 = pnand %p1478_p0, %p1472_p11 }
  0x98   :  { %1482 = shalt.err (!%p1479_p1)
}
  0x99   :  { %126 = dma.hbm_to_vmem [thread:$0]  %s1785_s10, 16, %s124_s17, [#allocation14]  }
  0x9a   :  { %1483 = dma.done.wait [#allocation3], 1024  }
  0x9b   :  { %1484 = vsyncadd [#allocation3], 4294966272 }
  0x9c   :  { %1485 = dma.done.wait [#allocation5], 2064  }
  0x9d   :  { %1486 = vsyncadd [#allocation5], 4294965232 }
  0x9e   :  { %1487 = dma.done.wait [#allocation8], 2064  }
  0x9f   :  { %1488 = vsyncadd [#allocation8], 4294965232 }
  0xa0   :  { %1489 = dma.done.wait [#allocation11], 1040  }
  0xa1   :  { %1490 = vsyncadd [#allocation11], 4294966256 }
  0xa2   :  { %1491 = dma.done.wait [#allocation14], 1040  }
  0xa3   :  { %1492 = vsyncadd [#allocation14], 4294966256  ;;  %v1506_v0 = vmov 0.0   ;;  %vm1507_vm0 = vmmov 0   ;;  %v1212_v1 = vld [vmem:[#allocation2] sm:$0xff]   ;;  %v1213_v2 = vld [vmem:[#allocation2 + $0x8] sm:$0xff]   ;;  %v300_v58 = vlaneseq }
  0xa4   :  { %1116 = vmatprep.subr.bf16.mxu0 %v1506_v0  ;;  %1132 = vmatprep.mubr.msk.bf16.mxu0 %vm1507_vm0, %v1506_v0  ;;  %v1214_v3 = vld [vmem:[#allocation2 + $0x10] sm:$0xff]   ;;  %v1215_v4 = vld [vmem:[#allocation2 + $0x18] sm:$0xff]   ;;  %v1223_v6 = vld [vmem:[#allocation6] ss:$8 sps:$4 sm:$0xff]   ;;  %v1508_v26 = vmov 0  }
  0xa5   :  { %1117 = vmatpush3.bf16.msra.mxu0 %v1212_v1  ;;  %v1221_v5 = vld [vmem:[#allocation6 + $0x4] ss:$8 sps:$4 sm:$0xff]   ;;  %v1224_v7 = vld [vmem:[#allocation6 + $0x14] ss:$8 sps:$4 sm:$0xff]   ;;  %v1226_v8 = vld [vmem:[#allocation6 + $0x10] ss:$8 sps:$4 sm:$0xff]   ;;  %422 = vmatprep.mubr.bf16.mxu1 %v1508_v26 }
  0xa6   :  { %1118 = vmatprep.subr.bf16.mxu0 %v1506_v0  ;;  %390 = vmatprep.subr.bf16.mxu1 %v1221_v5  ;;  %v1227_v9 = vld [vmem:[#allocation6 + $0x24] ss:$8 sps:$4 sm:$0xff]   ;;  %v1229_v12 = vld [vmem:[#allocation6 + $0x20] ss:$8 sps:$4 sm:$0xff]   ;;  %v1230_v13 = vld [vmem:[#allocation6 + $0x34] ss:$8 sps:$4 sm:$0xff]  }
  0xa7   :  { %391 = vmatpush1.bf16.msra.mxu1 %v1223_v6  ;;  %v1216_v10 = vld [vmem:[#allocation2 + $0x20] sm:$0xff]   ;;  %v1217_v11 = vld [vmem:[#allocation2 + $0x28] sm:$0xff]   ;;  %v1232_v14 = vld [vmem:[#allocation6 + $0x30] ss:$8 sps:$4 sm:$0xff]   ;;  %v301_v59 = vshrl.u32 %v300_v58, 7 }
  0xa8   :  { %392 = vmatprep.subr.bf16.mxu1 %v1224_v7  ;;  %v1233_v15 = vld [vmem:[#allocation6 + $0x44] ss:$8 sps:$4 sm:$0xff]   ;;  %v1235_v17 = vld [vmem:[#allocation6 + $0x40] ss:$8 sps:$4 sm:$0xff]   ;;  %v1236_v18 = vld [vmem:[#allocation6 + $0x54] ss:$8 sps:$4 sm:$0xff]  }
  0xa9   :  { %1119 = vmatpush3.bf16.msra.mxu0 %v1213_v2  ;;  %v1218_v16 = vld [vmem:[#allocation2 + $0x30] sm:$0xff]   ;;  %v1219_v19 = vld [vmem:[#allocation2 + $0x38] sm:$0xff]   ;;  %v1220_v21 = vld [vmem:[%s1775_s0] sm:$0xff]   ;;  %v302_v60 = vsub.s32 0, %v301_v59  ;;  %v306_v62 = vsub.s32 1, %v301_v59 }
  0xaa   :  { %1120 = vmatprep.subr.bf16.mxu0 %v1506_v0  ;;  %v1238_v20 = vld [vmem:[#allocation6 + $0x50] ss:$8 sps:$4 sm:$0xff]   ;;  %v1239_v22 = vld [vmem:[#allocation6 + $0x64] ss:$8 sps:$4 sm:$0xff]   ;;  %v1241_v23 = vld [vmem:[#allocation6 + $0x60] ss:$8 sps:$4 sm:$0xff]  }
  0xab   :  { %393 = vmatpush1.bf16.msra.mxu1 %v1226_v8  ;;  %v1242_v24 = vld [vmem:[#allocation6 + $0x74] ss:$8 sps:$4 sm:$0xff]   ;;  %v1244_v25 = vld [vmem:[#allocation6 + $0x70] ss:$8 sps:$4 sm:$0xff]   ;;  %v1245_v27 = vld [vmem:[#allocation7 + $0x40] sm:$0xff]  }
  0xac   :  { %394 = vmatprep.subr.bf16.mxu1 %v1227_v9  ;;  %v1246_v28 = vld [vmem:[#allocation7] sm:$0xff]   ;;  %v1247_v29 = vld [vmem:[#allocation7 + $0x48] sm:$0xff]   ;;  %v1249_v31 = vld [vmem:[#allocation7 + $0x50] sm:$0xff]  }
  0xad   :  { %1121 = vmatpush3.bf16.msra.mxu0 %v1214_v3  ;;  %v1248_v30 = vld [vmem:[#allocation7 + $0x8] sm:$0xff]   ;;  %v1250_v32 = vld [vmem:[#allocation7 + $0x10] sm:$0xff]   ;;  %v1251_v33 = vld [vmem:[#allocation7 + $0x58] sm:$0xff]  }
  0xae   :  { %1122 = vmatprep.subr.bf16.mxu0 %v1506_v0  ;;  %v1252_v34 = vld [vmem:[#allocation7 + $0x18] sm:$0xff]   ;;  %v1253_v35 = vld [vmem:[#allocation7 + $0x60] sm:$0xff]   ;;  %v1255_v37 = vld [vmem:[#allocation7 + $0x68] sm:$0xff]  }
  0xaf   :  { %395 = vmatpush1.bf16.msra.mxu1 %v1229_v12  ;;  %v1254_v36 = vld [vmem:[#allocation7 + $0x20] sm:$0xff]   ;;  %v979_v38 = vld [vmem:[#allocation4] ss:$0 sm:$0xff]  ;;  %v1256_v48 = vld [vmem:[#allocation7 + $0x28] sm:$0xff]  }
  0xb0   :  { %396 = vmatprep.subr.bf16.mxu1 %v1230_v13  ;;  %v1257_v49 = vld [vmem:[#allocation7 + $0x70] sm:$0xff]   ;;  %v1259_v51 = vld [vmem:[#allocation7 + $0x78] sm:$0xff]   ;;  %v1261_v53 = vld [vmem:[#allocation10] sm:$0xff]  }
  0xb1   :  { %1123 = vmatpush3.bf16.msra.mxu0 %v1215_v4  ;;  %v1258_v50 = vld [vmem:[#allocation7 + $0x30] sm:$0xff]   ;;  %v1260_v52 = vld [vmem:[#allocation7 + $0x38] sm:$0xff]   ;;  %v1265_v57 = vld [vmem:[#allocation10 + $0x20] sm:$0xff]  }
  0xb2   :  { %1124 = vmatprep.subr.bf16.mxu0 %v1506_v0  ;;  %v1262_v54 = vld [vmem:[#allocation10 + $0x8] sm:$0xff]   ;;  %v1263_v55 = vld [vmem:[#allocation10 + $0x10] sm:$0xff]   ;;  %v1264_v56 = vld [vmem:[#allocation10 + $0x18] sm:$0xff]  }
  0xb3   :  { %397 = vmatpush1.bf16.msra.mxu1 %v1232_v14  ;;  %v298_v61 = vld [vmem:[%s1779_s4] sm:$0x3]  ;;  %v1005_v26 = vld [vmem:[#allocation9] ss:$0 sm:$0xff] }
  0xb4   :  { %398 = vmatprep.subr.bf16.mxu1 %v1233_v15  ;;  %v303_v63 = vrot.slane %v298_v61, %v302_v60  ;;  %v307_v1 = vrot.slane %v298_v61, %v306_v62 }
  0xb5   :  { %1125 = vmatpush3.bf16.msra.mxu0 %v1216_v10 }
  0xb6   :  { %1126 = vmatprep.subr.bf16.mxu0 %v1506_v0 }
  0xb7   :  { %399 = vmatpush1.bf16.msra.mxu1 %v1235_v17  ;;  %v1267_v17 = vld [vmem:[#allocation10 + $0x30] sm:$0xff]  }
  0xb8   :  { %400 = vmatprep.subr.bf16.mxu1 %v1236_v18  ;;  %v1268_v18 = vld [vmem:[#allocation10 + $0x38] sm:$0xff]  }
  0xb9   :  { %1127 = vmatpush3.bf16.msra.mxu0 %v1217_v11 }
  0xba   :  { %1128 = vmatprep.subr.bf16.mxu0 %v1506_v0 }
  0xbb   :  { %401 = vmatpush1.bf16.msra.mxu1 %v1238_v20  ;;  %v1270_v20 = vld [vmem:[#allocation13 + $0x8] sm:$0xff]  }
  0xbc   :  { %402 = vmatprep.subr.bf16.mxu1 %v1239_v22  ;;  %v1272_v22 = vld [vmem:[#allocation13 + $0x18] sm:$0xff]  }
  0xbd   :  { %1129 = vmatpush3.bf16.msra.mxu0 %v1218_v16  ;;  %v1266_v16 = vld [vmem:[#allocation10 + $0x28] sm:$0xff]  }
  0xbe   :  { %1130 = vmatprep.subr.bf16.mxu0 %v1506_v0 }
  0xbf   :  { %403 = vmatpush1.bf16.msra.mxu1 %v1241_v23  ;;  %v1273_v23 = vld [vmem:[#allocation13 + $0x20] sm:$0xff]  }
  0xc0   :  { %404 = vmatprep.subr.bf16.mxu1 %v1242_v24  ;;  %v1274_v24 = vld [vmem:[#allocation13 + $0x28] sm:$0xff]  }
  0xc1   :  { %1131 = vmatpush3.bf16.msra.mxu0 %v1219_v19  ;;  %v1269_v19 = vld [vmem:[#allocation13] sm:$0xff]  }
  0xc2   :  { %1067 = vmatprep.subr.bf16.mxu0 %v1245_v27 }
  0xc3   :  { %405 = vmatpush1.bf16.msra.mxu1 %v1244_v25 }
  0xc4   :  { %1133 = vmatmul.mubr.bf16.vlgmr.msra.gmra.mrb[0].mxu0 %v1220_v21  ;;  %1136 = vmatprep.subr.bf16.mxu1 %v1506_v0  ;;  %v1271_v21 = vld [vmem:[#allocation13 + $0x10] sm:$0xff]  }
  0xc5   :  { %1068 = vmatpush3.bf16.msra.mxu0 %v1246_v28 }
  0xc6   :  { %1069 = vmatprep.subr.bf16.mxu0 %v1247_v29 }
  0xc9   :  { %1070 = vmatpush3.bf16.msra.mxu0 %v1248_v30 }
  0xca   :  { %1071 = vmatprep.subr.bf16.mxu0 %v1249_v31 }
  0xcd   :  { %1072 = vmatpush3.bf16.msra.mxu0 %v1250_v32 }
  0xce   :  { %1073 = vmatprep.subr.bf16.mxu0 %v1251_v33 }
  0xd1   :  { %1074 = vmatpush3.bf16.msra.mxu0 %v1252_v34 }
  0xd2   :  { %1075 = vmatprep.subr.bf16.mxu0 %v1253_v35 }
  0xd5   :  { %1076 = vmatpush3.bf16.msra.mxu0 %v1254_v36 }
  0xd6   :  { %1077 = vmatprep.subr.bf16.mxu0 %v1255_v37  ;;  %v1275_v37 = vld [vmem:[#allocation13 + $0x30] sm:$0xff]  }
  0xd9   :  { %1078 = vmatpush3.bf16.msra.mxu0 %v1256_v48 }
  0xda   :  { %1079 = vmatprep.subr.bf16.mxu0 %v1257_v49 }
  0xdd   :  { %1080 = vmatpush3.bf16.msra.mxu0 %v1258_v50 }
  0xde   :  { %1081 = vmatprep.subr.bf16.mxu0 %v1259_v51 }
  0xe1   :  { %1082 = vmatpush3.bf16.msra.mxu0 %v1260_v52 }
  0xe2   :  { %1156 = vmatprep.subr.bf16.mxu0 %v1506_v0 }
 0x197   :  { %v272_v39 = vpop.f32.mrb[0].mxu0 }
 0x198   :  { %v273_v40 = vadd.f32 %v979_v38, %v272_v39  ;;  %v1134_v41 = vpop.f32.mrb[1].mxu0  ;;  %v1277_v39 = vld [vmem:[%s1786_s11] sm:$0xff]  }
 0x199   :  { %v275_v42 = vpop.f32.mrb[2].mxu0  ;;  %v1279_v41 = vld [vmem:[%s1786_s11 + $0x10] sm:$0xff]  }
 0x19a   :  { %v276_v43 = vadd.f32 %v979_v38, %v275_v42  ;;  %v1135_v44 = vpop.f32.mrb[3].mxu0  ;;  %v279_v45 = vmax.f32 %v273_v40, 0.0  ;;  %v1276_v38 = vld [vmem:[#allocation13 + $0x38] sm:$0xff]   ;;  %v1278_v40 = vld [vmem:[%s1786_s11 + $0x8] sm:$0xff]  }
 0x19b   :  { %v1280_v42 = vld [vmem:[%s1786_s11 + $0x18] sm:$0xff]   ;;  %v1282_v44 = vld [vmem:[%s1786_s11 + $0x28] sm:$0xff]  }
 0x19c   :  { %v280_v46 = vmax.f32 %v276_v43, 0.0  ;;  %v1281_v43 = vld [vmem:[%s1786_s11 + $0x20] sm:$0xff]  }
 0x19e   :  { %v281_v47 = vpack.c.bf16 %v280_v46, %v279_v45  ;;  %v1022_v45 = vld [vmem:[#allocation12] ss:$0 sm:$0xff] }
 0x1a0   :  { %423 = vmatmul.mubr.bf16.vlgmr.msra.gmra.mrb[0].mxu1 %v281_v47 }
 0x1a1   :  { %1152 = vmatprep.mubr.msk.bf16.mxu1 %vm1507_vm0, %v1506_v0  ;;  %1137 = vmatpush3.bf16.msra.mxu1 %v1261_v53 }
 0x1a2   :  { %1138 = vmatprep.subr.bf16.mxu1 %v1506_v0 }
 0x1a5   :  { %1139 = vmatpush3.bf16.msra.mxu1 %v1262_v54 }
 0x1a6   :  { %1140 = vmatprep.subr.bf16.mxu1 %v1506_v0 }
 0x1a9   :  { %1141 = vmatpush3.bf16.msra.mxu1 %v1263_v55  ;;  %v1283_v55 = vld [vmem:[%s1786_s11 + $0x30] sm:$0xff]  }
 0x1aa   :  { %1142 = vmatprep.subr.bf16.mxu1 %v1506_v0 }
 0x1ad   :  { %1143 = vmatpush3.bf16.msra.mxu1 %v1264_v56  ;;  %v1284_v56 = vld [vmem:[%s1786_s11 + $0x38] sm:$0xff]  }
 0x1ae   :  { %1144 = vmatprep.subr.bf16.mxu1 %v1506_v0 }
 0x1b1   :  { %1145 = vmatpush3.bf16.msra.mxu1 %v1265_v57  ;;  %v1031_v57 = vld [vmem:[#allocation15] ss:$0 sm:$0xff] }
 0x1b2   :  { %1146 = vmatprep.subr.bf16.mxu1 %v1506_v0 }
 0x1b5   :  { %1147 = vmatpush3.bf16.msra.mxu1 %v1266_v16 }
 0x1b6   :  { %1148 = vmatprep.subr.bf16.mxu1 %v1506_v0 }
 0x1b9   :  { %1149 = vmatpush3.bf16.msra.mxu1 %v1267_v17 }
 0x1ba   :  { %1150 = vmatprep.subr.bf16.mxu1 %v1506_v0 }
 0x1bd   :  { %1151 = vmatpush3.bf16.msra.mxu1 %v1268_v18 }
 0x1be   :  { %1176 = vmatprep.subr.bf16.mxu1 %v1506_v0 }
 0x273   :  { %v424_v2 = vpop.f32.mrb[0].mxu1 }
 0x274   :  { %v425_v3 = vadd.f32 %v424_v2, %v303_v63  ;;  %v426_v4 = vpop.f32.mrb[1].mxu1 }
 0x275   :  { %v427_v5 = vadd.f32 %v426_v4, %v307_v1  ;;  %v428_v6 = vpop.f32.mrb[2].mxu1 }
 0x276   :  { %v429_v7 = vadd.f32 %v428_v6, %v303_v63  ;;  %v430_v8 = vpop.f32.mrb[3].mxu1  ;;  %v433_v10 = vmax.f32 %v425_v3, 0.0 }
 0x277   :  { %v431_v9 = vadd.f32 %v430_v8, %v307_v1  ;;  %v434_v12 = vmax.f32 %v427_v5, 0.0 }
 0x278   :  { %v435_v11 = vmax.f32 %v429_v7, 0.0 }
 0x279   :  { %v436_v13 = vmax.f32 %v431_v9, 0.0 }
 0x27a   :  { %v437_v14 = vpack.c.bf16 %v435_v11, %v433_v10 }
 0x27b   :  { %v438_v15 = vpack.c.bf16 %v436_v13, %v434_v12 }
 0x27d   :  { %606 = vmatprep.mubr.bf16.mxu0 %v438_v15 }
 0x27e   :  { %607 = vmatmul.mubr.bf16.vlgmr.msra.gmra.mrb[4].mxu0 %v437_v14 }
 0x27f   :  { %1172 = vmatprep.mubr.msk.bf16.mxu0 %vm1507_vm0, %v1506_v0  ;;  %1157 = vmatpush3.bf16.msra.mxu0 %v1269_v19 }
 0x280   :  { %1158 = vmatprep.subr.bf16.mxu0 %v1506_v0 }
 0x283   :  { %1159 = vmatpush3.bf16.msra.mxu0 %v1270_v20 }
 0x284   :  { %1160 = vmatprep.subr.bf16.mxu0 %v1506_v0 }
 0x287   :  { %1161 = vmatpush3.bf16.msra.mxu0 %v1271_v21 }
 0x288   :  { %1162 = vmatprep.subr.bf16.mxu0 %v1506_v0 }
 0x28b   :  { %1163 = vmatpush3.bf16.msra.mxu0 %v1272_v22 }
 0x28c   :  { %1164 = vmatprep.subr.bf16.mxu0 %v1506_v0 }
 0x28f   :  { %1165 = vmatpush3.bf16.msra.mxu0 %v1273_v23 }
 0x290   :  { %1166 = vmatprep.subr.bf16.mxu0 %v1506_v0 }
 0x293   :  { %1167 = vmatpush3.bf16.msra.mxu0 %v1274_v24 }
 0x294   :  { %1168 = vmatprep.subr.bf16.mxu0 %v1506_v0 }
 0x297   :  { %1169 = vmatpush3.bf16.msra.mxu0 %v1275_v37 }
 0x298   :  { %1170 = vmatprep.subr.bf16.mxu0 %v1506_v0 }
 0x29b   :  { %1171 = vmatpush3.bf16.msra.mxu0 %v1276_v38 }
 0x351   :  { %v1083_v25 = vpop.f32.mrb[4].mxu0 }
 0x352   :  { %v1084_v27 = vpop.f32.mrb[5].mxu0 }
 0x353   :  { %v1085_v28 = vadd.f32 %v1084_v27, %v1083_v25  ;;  %v1086_v29 = vpop.f32.mrb[6].mxu0 }
 0x354   :  { %v1087_v30 = vpop.f32.mrb[7].mxu0 }
 0x355   :  { %v609_v31 = vadd.f32 %v1085_v28, %v1005_v26  ;;  %v1088_v32 = vadd.f32 %v1087_v30, %v1086_v29 }
 0x357   :  { %v612_v33 = vadd.f32 %v1088_v32, %v1005_v26  ;;  %v615_v34 = vmax.f32 %v609_v31, 0.0 }
 0x359   :  { %v616_v35 = vmax.f32 %v612_v33, 0.0 }
 0x35b   :  { %v617_v36 = vpack.c.bf16 %v616_v35, %v615_v34 }
 0x35d   :  { %1153 = vmatmul.mubr.bf16.vlgmr.msra.gmra.mrb[4].mxu1 %v617_v36 }
 0x35e   :  { %1192 = vmatprep.mubr.msk.bf16.mxu1 %vm1507_vm0, %v1506_v0  ;;  %1177 = vmatpush3.bf16.msra.mxu1 %v1277_v39 }
 0x35f   :  { %1178 = vmatprep.subr.bf16.mxu1 %v1506_v0 }
 0x362   :  { %1179 = vmatpush3.bf16.msra.mxu1 %v1278_v40 }
 0x363   :  { %1180 = vmatprep.subr.bf16.mxu1 %v1506_v0 }
 0x366   :  { %1181 = vmatpush3.bf16.msra.mxu1 %v1279_v41 }
 0x367   :  { %1182 = vmatprep.subr.bf16.mxu1 %v1506_v0 }
 0x36a   :  { %1183 = vmatpush3.bf16.msra.mxu1 %v1280_v42 }
 0x36b   :  { %1184 = vmatprep.subr.bf16.mxu1 %v1506_v0 }
 0x36e   :  { %1185 = vmatpush3.bf16.msra.mxu1 %v1281_v43 }
 0x36f   :  { %1186 = vmatprep.subr.bf16.mxu1 %v1506_v0 }
 0x372   :  { %1187 = vmatpush3.bf16.msra.mxu1 %v1282_v44 }
 0x373   :  { %1188 = vmatprep.subr.bf16.mxu1 %v1506_v0 }
 0x376   :  { %1189 = vmatpush3.bf16.msra.mxu1 %v1283_v55 }
 0x377   :  { %1190 = vmatprep.subr.bf16.mxu1 %v1506_v0  ;;  %v1040_v0 = vld [vmem:[%s1787_s12] ss:$0 sm:$0xff] }
 0x37a   :  { %1191 = vmatpush3.bf16.msra.mxu1 %v1284_v56 }
 0x430   :  { %v723_v46 = vpop.f32.mrb[4].mxu1 }
 0x431   :  { %v724_v47 = vadd.f32 %v1022_v45, %v723_v46  ;;  %v1154_v48 = vpop.f32.mrb[5].mxu1 }
 0x432   :  { %v726_v49 = vpop.f32.mrb[6].mxu1 }
 0x433   :  { %v727_v50 = vadd.f32 %v1022_v45, %v726_v49  ;;  %v1155_v51 = vpop.f32.mrb[7].mxu1  ;;  %v730_v52 = vmax.f32 %v724_v47, 0.0 }
 0x435   :  { %v731_v53 = vmax.f32 %v727_v50, 0.0 }
 0x437   :  { %v732_v54 = vpack.c.bf16 %v731_v53, %v730_v52 }
 0x439   :  { %1173 = vmatmul.mubr.bf16.vlgmr.msra.gmra.mrb[8].mxu0 %v732_v54 }
 0x50c   :  { %v838_v58 = vpop.f32.mrb[8].mxu0 }
 0x50d   :  { %v839_v59 = vadd.f32 %v1031_v57, %v838_v58  ;;  %v1174_v60 = vpop.f32.mrb[9].mxu0 }
 0x50e   :  { %v841_v61 = vpop.f32.mrb[10].mxu0 }
 0x50f   :  { %v842_v62 = vadd.f32 %v1031_v57, %v841_v61  ;;  %v1175_v63 = vpop.f32.mrb[11].mxu0  ;;  %v845_v1 = vmax.f32 %v839_v59, 0.0 }
 0x511   :  { %v846_v2 = vmax.f32 %v842_v62, 0.0 }
 0x513   :  { %v847_v3 = vpack.c.bf16 %v846_v2, %v845_v1 }
 0x515   :  { %1193 = vmatmul.mubr.bf16.vlgmr.msra.gmra.mrb[8].mxu1 %v847_v3 }
 0x5e8   :  { %v953_v4 = vpop.f32.mrb[8].mxu1 }
 0x5e9   :  { %v1194_v5 = vpop.f32.mrb[9].mxu1  ;;  %v954_v7 = vadd.f32 %v1040_v0, %v953_v4 }
 0x5ea   :  { %v956_v6 = vpop.f32.mrb[10].mxu1 }
 0x5eb   :  { %v957_v8 = vadd.f32 %v1040_v0, %v956_v6  ;;  %v1195_v9 = vpop.f32.mrb[11].mxu1 }
 0x5ed   :  { %v1056_v10 = vpack.c.bf16 %v957_v8, %v954_v7 }
 0x5ef   :  { %1057 = vst [vmem:[%s1788_s13] sm:$0xff] %v1056_v10  }
 0x5f0   :  { %974 = vsyncpa [#allocation3], 1 }
 0x5f1   :  { %975 = vsyncpa [#allocation5], 1 }
 0x5f2   :  { %976 = vsyncpa [#allocation8], 1 }
 0x5f3   :  { %977 = vsyncpa [#allocation11], 1 }
 0x5f4   :  { %978 = vsyncpa [#allocation14], 1 }

</bundles_post_ra>
